<compile_context>
chip_gen: v6e
topology: v6e:2x2x1
jax: 0.10.0
libtpu: 0.0.40
codegen_flags: <defaults>
</compile_context>

<pallas_src>
import functools
import numpy as np

import jax
import jax.numpy as jnp
from jax.experimental import pallas as pl
from jax.experimental.pallas import tpu as pltpu

# ----------------------------------------------------------------------------
# TinyViT-11m configuration (param_mode='11m' in the PyTorch module)
# ----------------------------------------------------------------------------
IMG_SIZE = 224
EMBED_DIMS = [64, 128, 256, 448]
DEPTHS = [2, 2, 6, 2]
NUM_HEADS = [2, 4, 8, 14]
WINDOW_SIZES = [7, 7, 14, 7]
MLP_RATIO = 4
BN_EPS = 1e-5

BF16 = jnp.bfloat16
F32 = jnp.float32
VMEM_LIMIT = 40 * 1024 * 1024     # safe on v5e/v6e (128 MiB) and v7x (64 MiB)


def gelu_f32(x):
    # torch.nn.GELU default (erf) evaluated in f32, result stored bf16.
    return jax.nn.gelu(x.astype(F32), approximate=False).astype(BF16)


# ----------------------------------------------------------------------------
# Pallas kernel 1: fused  Y = X @ W + b   (bf16 MXU inputs, f32 accumulation)
# ----------------------------------------------------------------------------
def _mm_bias_kernel(a_ref, w_ref, b_ref, o_ref):
    acc = jnp.dot(a_ref[...], w_ref[...], preferred_element_type=jnp.float32)
    acc = acc + b_ref[...]                      # (1, N) f32 broadcast
    o_ref[...] = acc.astype(o_ref.dtype)


@functools.lru_cache(maxsize=None)
def _build_mm(M, K, N, tm, out_dtype):
    grid = (pl.cdiv(M, tm),)
    fn = pl.pallas_call(
        _mm_bias_kernel,
        out_shape=jax.ShapeDtypeStruct((M, N), out_dtype),
        grid_spec=pltpu.PrefetchScalarGridSpec(
            num_scalar_prefetch=0,
            grid=grid,
            in_specs=[
                pl.BlockSpec((tm, K), lambda i: (i, 0)),   # activation tile
                pl.BlockSpec((K, N), lambda i: (0, 0)),    # VMEM-resident weight
                pl.BlockSpec((1, N), lambda i: (0, 0)),    # bias (f32)
            ],
            out_specs=pl.BlockSpec((tm, N), lambda i: (i, 0)),
        ),
        compiler_params=pltpu.CompilerParams(
            dimension_semantics=("parallel",),
            vmem_limit_bytes=VMEM_LIMIT,
        ),
    )
    return jax.jit(fn)


def _pick_tm(M):
    # full extent for small M (no (8,128) issue), 512-row tiles otherwise
    return M if M <= 1024 else 512


def matmul_bias(p, x2d, out_dtype=BF16):
    """(M, K) @ (K, N) + b ; inputs cast to bf16, f32 accumulation on the MXU."""
    M, K = x2d.shape
    N = p['w'].shape[1]
    fn = _build_mm(M, K, N, _pick_tm(M), out_dtype)
    return fn(x2d.astype(BF16), p['w'].astype(BF16),
              p['b'].reshape(1, N).astype(F32))


# ----------------------------------------------------------------------------
# Pallas kernel 2: fused windowed attention (QK^T + bias + softmax + A@V)
# ----------------------------------------------------------------------------
def _attn_kernel(q_ref, k_ref, v_ref, bias_ref, o_ref, *, scale):
    q = q_ref[...]                                       # (Bw, N, kd) bf16
    k = k_ref[...]
    v = v_ref[...]
    s = jnp.einsum('bnd,bmd->bnm', q, k,
                   preferred_element_type=jnp.float32) * scale
    s = s + bias_ref[...][None]                          # (Bw, N, N) f32
    s = s - jnp.max(s, axis=-1, keepdims=True)
    p = jnp.exp(s)
    p = p / jnp.sum(p, axis=-1, keepdims=True)
    o = jnp.einsum('bnm,bmd->bnd', p.astype(v.dtype), v,
                   preferred_element_type=jnp.float32)
    o_ref[...] = o.astype(o_ref.dtype)


@functools.lru_cache(maxsize=None)
def _build_attn(Bw, nh, N, kd, scale):
    kernel = functools.partial(_attn_kernel, scale=scale)
    qkv_spec = pl.BlockSpec((Bw, None, N, kd), lambda h: (0, h, 0, 0))
    fn = pl.pallas_call(
        kernel,
        out_shape=jax.ShapeDtypeStruct((Bw, nh, N, kd), BF16),
        grid_spec=pltpu.PrefetchScalarGridSpec(
            num_scalar_prefetch=0,
            grid=(nh,),
            in_specs=[qkv_spec, qkv_spec, qkv_spec,
                      pl.BlockSpec((None, N, N), lambda h: (h, 0, 0))],
            out_specs=pl.BlockSpec((Bw, None, N, kd), lambda h: (0, h, 0, 0)),
        ),
        compiler_params=pltpu.CompilerParams(
            dimension_semantics=("parallel",),
            vmem_limit_bytes=VMEM_LIMIT,
        ),
    )
    return jax.jit(fn)


def fused_window_attention(q, k, v, bias, scale):
    Bw, nh, N, kd = q.shape
    fn = _build_attn(Bw, nh, N, kd, float(scale))
    return fn(q.astype(BF16), k.astype(BF16), v.astype(BF16), bias.astype(F32))


# ----------------------------------------------------------------------------
# Pallas kernel 3: depthwise 3x3 conv (stride 1, pad 1) + folded-BN bias, NHWC
# ----------------------------------------------------------------------------
def _dwconv_kernel(x_ref, w_ref, b_ref, o_ref):
    Ho, Wo, C = o_ref.shape[1], o_ref.shape[2], o_ref.shape[3]
    w = w_ref[...].astype(jnp.float32)                   # (3, 3, C)
    acc = jnp.zeros((Ho, Wo, C), jnp.float32)
    for kh in range(3):
        for kw in range(3):
            sl = x_ref[0, pl.ds(kh, Ho), pl.ds(kw, Wo), :].astype(jnp.float32)
            acc = acc + sl * w[kh, kw][None, None, :]
    acc = acc + b_ref[...][None, :, :]                   # (1, 1, C)
    o_ref[0] = acc.astype(o_ref.dtype)


@functools.lru_cache(maxsize=None)
def _build_dwconv(B, H, W, C):
    Hp, Wp = H + 2, W + 2
    fn = pl.pallas_call(
        _dwconv_kernel,
        out_shape=jax.ShapeDtypeStruct((B, H, W, C), BF16),
        grid_spec=pltpu.PrefetchScalarGridSpec(
            num_scalar_prefetch=0,
            grid=(B,),
            in_specs=[
                pl.BlockSpec((1, Hp, Wp, C), lambda b: (b, 0, 0, 0)),
                pl.BlockSpec((3, 3, C), lambda b: (0, 0, 0)),
                pl.BlockSpec((1, C), lambda b: (0, 0)),
            ],
            out_specs=pl.BlockSpec((1, H, W, C), lambda b: (b, 0, 0, 0)),
        ),
        compiler_params=pltpu.CompilerParams(
            dimension_semantics=("parallel",),
            vmem_limit_bytes=VMEM_LIMIT,
        ),
    )
    return jax.jit(fn)


def dwconv3x3_bn_s1(p, x):
    """Depthwise 3x3, stride 1, pad 1, BN folded. x: (B,H,W,C) channels-last."""
    B, H, W, C = x.shape
    xp = jnp.pad(x.astype(BF16), ((0, 0), (1, 1), (1, 1), (0, 0)))
    return _build_dwconv(B, H, W, C)(xp, p['w'].astype(F32),
                                     p['b'].reshape(1, C).astype(F32))


def dwconv3x3_bn_s2(p, x):
    # TODO(synk): stride-2 depthwise 3x3 stays as channels-last plain-JAX
    #             shifted adds (only 2 small instances in the whole network).
    B, H, W, C = x.shape
    xp = jnp.pad(x.astype(F32), ((0, 0), (1, 1), (1, 1), (0, 0)))
    Ho, Wo = (H - 1) // 2 + 1, (W - 1) // 2 + 1
    w = p['w'].astype(F32)
    acc = jnp.zeros((B, Ho, Wo, C), F32)
    for kh in range(3):
        for kw in range(3):
            sl = xp[:, kh:kh + 2 * (Ho - 1) + 1:2,
                    kw:kw + 2 * (Wo - 1) + 1:2, :]
            acc = acc + sl * w[kh, kw]
    return (acc + p['b']).astype(BF16)


# ----------------------------------------------------------------------------
# Layer helpers (channels-last, eval mode)
# ----------------------------------------------------------------------------
def layernorm(p, x, eps=1e-5, out_dtype=BF16):
    xf = x.astype(F32)
    mu = jnp.mean(xf, axis=-1, keepdims=True)
    var = jnp.mean(jnp.square(xf - mu), axis=-1, keepdims=True)
    y = (xf - mu) * jax.lax.rsqrt(var + eps) * p['g'] + p['b']
    return y.astype(out_dtype)


def conv1x1_bn(p, x, act=False):                 # 1x1 Conv2d_BN (BN folded)
    B, H, W, C = x.shape
    y = matmul_bias(p, x.reshape(B * H * W, C))
    if act:
        y = gelu_f32(y)
    return y.reshape(B, H, W, p['w'].shape[1])


def conv3x3_s2_bn(p, x, act=False):              # full 3x3 s2 conv via im2col
    B, H, W, Cin = x.shape
    xp = jnp.pad(x, ((0, 0), (1, 1), (1, 1), (0, 0)))
    Ho, Wo = (H - 1) // 2 + 1, (W - 1) // 2 + 1
    cols = []
    for kh in range(3):
        for kw in range(3):
            cols.append(xp[:, kh:kh + 2 * (Ho - 1) + 1:2,
                           kw:kw + 2 * (Wo - 1) + 1:2, :])
    patches = jnp.stack(cols, axis=3).reshape(B * Ho * Wo, 9 * Cin)
    y = matmul_bias(p, patches)
    if act:
        y = gelu_f32(y)
    return y.reshape(B, Ho, Wo, p['w'].shape[1])


# ----------------------------------------------------------------------------
# TinyViT building blocks (inference mode; DropPath/Dropout are identity)
# ----------------------------------------------------------------------------
def mbconv(p, x):
    shortcut = x
    x = conv1x1_bn(p['c1'], x, act=True)
    x = gelu_f32(dwconv3x3_bn_s1(p['c2'], x))
    x = conv1x1_bn(p['c3'], x, act=False)
    return gelu_f32(x.astype(F32) + shortcut.astype(F32))


def patch_merging(p, x, stride):
    x = conv1x1_bn(p['c1'], x, act=True)
    if stride == 2:
        x = gelu_f32(dwconv3x3_bn_s2(p['c2'], x))
    else:
        x = gelu_f32(dwconv3x3_bn_s1(p['c2'], x))
    return conv1x1_bn(p['c3'], x, act=False)


def attention(p, x, nh, kd):
    Bw, N, C = x.shape
    xn = layernorm(p['norm'], x)
    qkv = matmul_bias(p['qkv'], xn.reshape(Bw * N, C))
    qkv = qkv.reshape(Bw, N, nh, 3, kd).transpose(3, 0, 2, 1, 4)  # (3,Bw,nh,N,kd)
    o = fused_window_attention(qkv[0], qkv[1], qkv[2], p['bias'], kd ** -0.5)
    o = o.transpose(0, 2, 1, 3).reshape(Bw * N, nh * kd)
    o = matmul_bias(p['proj'], o)
    return o.reshape(Bw, N, -1)


def mlp(p, x):
    Bw, N, C = x.shape
    xn = layernorm(p['norm'], x).reshape(Bw * N, C)
    h = gelu_f32(matmul_bias(p['fc1'], xn))
    return matmul_bias(p['fc2'], h).reshape(Bw, N, C)


def vit_block(p, x, ws, nh, kd):
    B, H, W, C = x.shape
    L = H * W
    xt = x.reshape(B, L, C)
    res_x = xt
    if H == ws and W == ws:
        aw = attention(p['attn'], xt, nh, kd).reshape(B, L, C)
    else:
        nH, nW = H // ws, W // ws
        xw = x.reshape(B, nH, ws, nW, ws, C).transpose(0, 1, 3, 2, 4, 5)
        xw = xw.reshape(B * nH * nW, ws * ws, C)
        aw = attention(p['attn'], xw, nh, kd)
        aw = aw.reshape(B, nH, nW, ws, ws, C).transpose(0, 1, 3, 2, 4, 5)
        aw = aw.reshape(B, L, C)
    xt = (res_x.astype(F32) + aw.astype(F32)).astype(BF16)
    xc = dwconv3x3_bn_s1(p['local_conv'], xt.reshape(B, H, W, C))
    xt = xc.reshape(B, L, C)
    xt = (xt.astype(F32) + mlp(p['mlp'], xt).astype(F32)).astype(BF16)
    return xt.reshape(B, H, W, C)


# ----------------------------------------------------------------------------
# Deterministic parameter initialization (eval-mode BN folded into weights)
# ----------------------------------------------------------------------------
class KeyGen:
    def __init__(self, seed):
        self._key = jax.random.PRNGKey(seed)

    def __call__(self):
        self._key, sub = jax.random.split(self._key)
        return sub


def _nrm(kg, shape, scale):
    return jax.random.normal(kg(), shape, dtype=F32) * scale


def _bn_fold(cout, eps=BN_EPS):
    # BatchNorm eval stats: gamma=1, beta=0, running_mean=0, running_var=1
    g = jnp.ones((cout,), F32)
    b = jnp.zeros((cout,), F32)
    m = jnp.zeros((cout,), F32)
    v = jnp.ones((cout,), F32)
    s = g / jnp.sqrt(v + eps)
    return s, b - m * s


def init_ln(dim):
    return {'g': jnp.ones((dim,), F32), 'b': jnp.zeros((dim,), F32)}


def init_linear(kg, din, dout):
    return {'w': _nrm(kg, (din, dout), 1.0 / np.sqrt(din)).astype(BF16),
            'b': jnp.zeros((dout,), F32)}


def init_conv1x1_bn(kg, cin, cout):
    w = _nrm(kg, (cin, cout), 1.0 / np.sqrt(cin))
    s, sh = _bn_fold(cout)
    return {'w': (w * s[None, :]).astype(BF16), 'b': sh}


def init_conv3x3_bn(kg, cin, cout):
    w = _nrm(kg, (cin * 9, cout), 1.0 / np.sqrt(cin * 9))
    s, sh = _bn_fold(cout)
    return {'w': (w * s[None, :]).astype(BF16), 'b': sh}


def init_dwconv_bn(kg, c):
    w = _nrm(kg, (3, 3, c), 1.0 / 3.0)
    s, sh = _bn_fold(c)
    return {'w': (w * s[None, None, :]).astype(F32), 'b': sh}


def build_attention_bias_idxs(ws):
    points = [(i, j) for i in range(ws) for j in range(ws)]
    offsets, idxs = {}, []
    for p1 in points:
        for p2 in points:
            off = (abs(p1[0] - p2[0]), abs(p1[1] - p2[1]))
            if off not in offsets:
                offsets[off] = len(offsets)
            idxs.append(offsets[off])
    N = len(points)
    return np.array(idxs, dtype=np.int32).reshape(N, N), len(offsets)


def init_attention(kg, dim, num_heads, key_dim, ws):
    idxs, n_off = build_attention_bias_idxs(ws)
    ab = _nrm(kg, (num_heads, n_off), 0.02)
    N = idxs.shape[0]
    bias = ab[:, jnp.asarray(idxs.reshape(-1))].reshape(num_heads, N, N)
    return {'norm': init_ln(dim),
            'qkv': init_linear(kg, dim, 3 * num_heads * key_dim),
            'proj': init_linear(kg, num_heads * key_dim, dim),
            'bias': bias.astype(F32)}


def init_block(kg, dim, num_heads, ws):
    key_dim = dim // num_heads
    return {'attn': init_attention(kg, dim, num_heads, key_dim, ws),
            'local_conv': init_dwconv_bn(kg, dim),
            'mlp': {'norm': init_ln(dim),
                    'fc1': init_linear(kg, dim, dim * MLP_RATIO),
                    'fc2': init_linear(kg, dim * MLP_RATIO, dim)}}


def init_mbconv(kg, dim, expand=4):
    hid = dim * expand
    return {'c1': init_conv1x1_bn(kg, dim, hid),
            'c2': init_dwconv_bn(kg, hid),
            'c3': init_conv1x1_bn(kg, hid, dim)}


def init_patch_merging(kg, dim, out_dim):
    return {'c1': init_conv1x1_bn(kg, dim, out_dim),
            'c2': init_dwconv_bn(kg, out_dim),
            'c3': init_conv1x1_bn(kg, out_dim, out_dim)}


def init_tiny_vit_11m(seed, num_classes):
    kg = KeyGen(seed)
    p = {'pe1': init_conv3x3_bn(kg, 1, EMBED_DIMS[0] // 2),
         'pe2': init_conv3x3_bn(kg, EMBED_DIMS[0] // 2, EMBED_DIMS[0]),
         'stage0': {'blocks': [init_mbconv(kg, EMBED_DIMS[0])
                               for _ in range(DEPTHS[0])],
                    'down': init_patch_merging(kg, EMBED_DIMS[0], EMBED_DIMS[1])}}
    stages = []
    for i in (1, 2, 3):
        st = {'blocks': [init_block(kg, EMBED_DIMS[i], NUM_HEADS[i], WINDOW_SIZES[i])
                         for _ in range(DEPTHS[i])]}
        if i < 3:
            st['down'] = init_patch_merging(kg, EMBED_DIMS[i], EMBED_DIMS[i + 1])
        stages.append(st)
    p['stages'] = stages
    p['norm_head'] = init_ln(EMBED_DIMS[3])
    p['head'] = init_linear(kg, EMBED_DIMS[3], num_classes)
    return p


# ----------------------------------------------------------------------------
# Forward passes
# ----------------------------------------------------------------------------
def tiny_vit_forward(p, x):
    # x: (B, 224, 224, 1) channels-last bf16
    x = conv3x3_s2_bn(p['pe1'], x, act=True)              # (B,112,112,32)
    x = conv3x3_s2_bn(p['pe2'], x, act=False)             # (B, 56, 56,64)
    for bp in p['stage0']['blocks']:
        x = mbconv(bp, x)
    x = patch_merging(p['stage0']['down'], x, stride=2)   # (B, 28, 28,128)
    for i, st in enumerate(p['stages']):
        s = i + 1
        dim, nh, ws = EMBED_DIMS[s], NUM_HEADS[s], WINDOW_SIZES[s]
        kd = dim // nh
        for bp in st['blocks']:
            x = vit_block(bp, x, ws, nh, kd)
        if 'down' in st:
            out_dim = EMBED_DIMS[s + 1]
            stride = 1 if out_dim in (320, 448, 576) else 2   # TinyViT rule
            x = patch_merging(st['down'], x, stride=stride)
    B, H, W, C = x.shape
    feat = jnp.mean(x.reshape(B, H * W, C).astype(F32), axis=1)   # (B, 448)
    feat = layernorm(p['norm_head'], feat, out_dtype=F32)
    return matmul_bias(p['head'], feat, out_dtype=F32)


def _bilinear_matrix(in_size, out_size):
    # torch F.interpolate(mode='bilinear', align_corners=False) weights
    A = np.zeros((out_size, in_size), dtype=np.float32)
    scale = in_size / out_size
    for o in range(out_size):
        src = (o + 0.5) * scale - 0.5
        if src < 0.0:
            src = 0.0
        i0 = min(int(np.floor(src)), in_size - 1)
        i1 = min(i0 + 1, in_size - 1)
        lam = src - i0
        A[o, i0] += 1.0 - lam
        A[o, i1] += lam
    return A


def _resize_weights(in_size, out_size):
    A = _bilinear_matrix(in_size, out_size).T             # (in, out)
    return {'w': jnp.asarray(A, dtype=BF16),
            'b': jnp.zeros((out_size,), F32)}


def tinyvit_wrapper_forward(params, x):
    # x: (B, 1, H, W) NCHW float32 (PyTorch-layout input)
    B, C, H, W = x.shape
    pw = _resize_weights(W, IMG_SIZE)
    ph = _resize_weights(H, IMG_SIZE)
    # separable bilinear resize via two Pallas matmuls
    t = matmul_bias(pw, x.reshape(B * C * H, W))                  # (B*C*H, 224)
    t = t.reshape(B * C, H, IMG_SIZE).transpose(0, 2, 1)
    t = matmul_bias(ph, t.reshape(B * C * IMG_SIZE, H))           # (B*C*224, 224)
    x224 = t.reshape(B * C, IMG_SIZE, IMG_SIZE).transpose(0, 2, 1)
    x224 = x224.reshape(B, C, IMG_SIZE, IMG_SIZE).transpose(0, 2, 3, 1)  # NHWC
    return tiny_vit_forward(params, x224.astype(BF16))


# ----------------------------------------------------------------------------
if __name__ == "__main__":
    num_classes = 10
    params = init_tiny_vit_11m(seed=0, num_classes=num_classes)

    key = jax.random.PRNGKey(0)
    x = jax.random.normal(key, (2, 1, 16, 16), dtype=jnp.float32)   # NCHW, in_chans=1

    logits = tinyvit_wrapper_forward(params, x)
    logits = jax.block_until_ready(logits)
    assert logits.shape == (2, num_classes)
    assert bool(jnp.all(jnp.isfinite(logits)))
    print("KERNEL_OK")
</pallas_src>

<mosaic_0001>
module attributes {stable_mosaic.version = 11 : i64} {
  func.func @_mm_bias_kernel(%arg0: i32, %arg1: memref<32x16xbf16, #tpu.memory_space<vmem>>, %arg2: memref<16x224xbf16, #tpu.memory_space<vmem>>, %arg3: memref<1x224xf32, #tpu.memory_space<vmem>>, %arg4: memref<32x224xbf16, #tpu.memory_space<vmem>>) attributes {dimension_semantics = [#tpu.dimension_semantics<parallel>], iteration_bounds = array<i64: 1>, scalar_prefetch = 0 : i64, scratch_operands = 0 : i64, tpu.core_type = #tpu.core_type<tc>, window_params = [{transform_indices = @transform_0, window_bounds = array<i64: 32, 16>}, {pipeline_mode = #tpu.pipeline_mode<synchronous>, transform_indices = @transform_1, window_bounds = array<i64: 16, 224>}, {pipeline_mode = #tpu.pipeline_mode<synchronous>, transform_indices = @transform_2, window_bounds = array<i64: 1, 224>}, {transform_indices = @transform_3, window_bounds = array<i64: 32, 224>}]} {
    %c0 = arith.constant 0 : index
    %c0_0 = arith.constant 0 : index
    %0 = vector.load %arg1[%c0, %c0_0] : memref<32x16xbf16, #tpu.memory_space<vmem>>, vector<32x16xbf16>
    %c0_1 = arith.constant 0 : index
    %c0_2 = arith.constant 0 : index
    %1 = vector.load %arg2[%c0_1, %c0_2] : memref<16x224xbf16, #tpu.memory_space<vmem>>, vector<16x224xbf16>
    %cst = arith.constant dense<0.000000e+00> : vector<32x224xf32>
    %2 = tpu.matmul %0, %1, %cst {dimension_numbers = #tpu.dot_dimension_numbers<[1], [0], [0], [1], [0, 0, 1, 1], [], []>} : vector<32x16xbf16>, vector<16x224xbf16>, vector<32x224xf32> -> vector<32x224xf32>
    %c0_3 = arith.constant 0 : index
    %c0_4 = arith.constant 0 : index
    %3 = vector.load %arg3[%c0_3, %c0_4] : memref<1x224xf32, #tpu.memory_space<vmem>>, vector<1x224xf32>
    %4 = vector.broadcast %3 : vector<1x224xf32> to vector<32x224xf32>
    %5 = arith.addf %2, %4 : vector<32x224xf32>
    %6 = arith.truncf %5 : vector<32x224xf32> to vector<32x224xbf16>
    %c0_5 = arith.constant 0 : index
    %c0_6 = arith.constant 0 : index
    %7 = vector.load %arg4[%c0_5, %c0_6] : memref<32x224xbf16, #tpu.memory_space<vmem>>, vector<32x224xbf16>
    tpu.vector_store %arg4[%c0_5, %c0_6], %6 {strides = array<i32>} : memref<32x224xbf16, #tpu.memory_space<vmem>>, vector<32x224xbf16>,
    return
  }
  func.func @transform_0(%arg0: i32) -> (i32, i32) {
    %c0_i32 = arith.constant 0 : i32
    %c0_i32_0 = arith.constant 0 : i32
    return %arg0, %c0_i32 : i32, i32
  }
  func.func @transform_1(%arg0: i32) -> (i32, i32) {
    %c0_i32 = arith.constant 0 : i32
    %c0_i32_0 = arith.constant 0 : i32
    %c0_i32_1 = arith.constant 0 : i32
    return %c0_i32, %c0_i32_0 : i32, i32
  }
  func.func @transform_2(%arg0: i32) -> (i32, i32) {
    %c0_i32 = arith.constant 0 : i32
    %c0_i32_0 = arith.constant 0 : i32
    %c0_i32_1 = arith.constant 0 : i32
    return %c0_i32, %c0_i32_0 : i32, i32
  }
  func.func @transform_3(%arg0: i32) -> (i32, i32) {
    %c0_i32 = arith.constant 0 : i32
    %c0_i32_0 = arith.constant 0 : i32
    return %arg0, %c0_i32 : i32, i32
  }
}

</mosaic_0001>

<bundles_post_ra>
// kernel: tpu_custom_call.1
= control target key start
LH: loop header
LB: loop body
LE: loop exit
PB: predicated region body
PF: predicated region fallthrough
CT: control target
= control target key end

     0   :  { %v208_v2 = vmov 0   ;;  %vm54_vm0 = vcmask 130048   ;;  %s262_s0 = inlined_call_operand.vmem [shape: bf16[32,16], index: 0, kind: input, shape index: {}]   ;;  %s263_s1 = inlined_call_operand.vmem [shape: bf16[16,224], index: 1, kind: input, shape index: {}]   ;;  %s264_s2 = inlined_call_operand.vmem [shape: f32[1,224], index: 2, kind: input, shape index: {}]   ;;  %s265_s3 = inlined_call_operand.hbm [shape: bf16[32,224], index: 3, kind: output, shape index: {}]  }
   0x1   :  { %v181_v0 = vld [vmem:[%s263_s1 + $0x4] ss:$8 sps:$4 sm:$0xff]   ;;  %v183_v1 = vld [vmem:[%s263_s1] ss:$8 sps:$4 sm:$0xff]   ;;  %93 = vmatprep.mubr.bf16.mxu0 %v208_v2  ;;  %103 = vmatprep.mubr.bf16.mxu1 %v208_v2 }
   0x2   :  { %75 = vmatprep.subr.bf16.mxu0 %v181_v0  ;;  %175 = vmatprep.subr.bf16.mxu1 %v181_v0  ;;  %v184_v3 = vld [vmem:[%s262_s0] sm:$0xff]   ;;  %v185_v4 = vld [vmem:[%s262_s0 + $0x8] sm:$0xff]  }
   0x3   :  { %76 = vmatpush1.bf16.msra.mxu0 %v183_v1  ;;  %176 = vmatpush1.bf16.msra.mxu1 %v183_v1 }
   0x4   :  { %8 = vsyncpa [#allocation3], 0  ;;  %v24_v5 = vlaneseq  ;;  %v22_v9 = vld [vmem:[%s264_s2] sm:$0x3]  ;;  %vm138_vm1 = vcmask 1043456   ;;  %vm139_vm2 = vcmask 785412  }
   0x5   :  { %vm247_vm3 = vmor %vm139_vm2, %vm138_vm1  ;;  %s209_s0 = smov [#allocation2]  }
   0x6   :  { %165 = vmatmul.mubr.msk.bf16.vlgmr.msra.gmra.mxu0 %vm54_vm0, %v184_v3  ;;  %166 = vmatmul.mubr.msk.bf16.vlgmr.msra.gmra.mxu1 %vm54_vm0, %v185_v4  ;;  %v25_v6 = vshrl.u32 %v24_v5, 7  ;;  %s150_s2 = sshll.u32 %s209_s0, 4  ;;  %s151_s2 = int_to_ptr.vmem [resolvable:$true] %s150_s2 }
   0x7   :  { %s186_s21 = scalar_lea.vmem %s151_s2, 512  ;;  %p191_p1 = scmp.lt.s32.totalorder %s151_s2, %s151_s2 }
   0x8   :  { %v26_v7 = vsub.s32 0, %v25_v6  ;;  %v30_v8 = vsub.s32 1, %v25_v6  ;;  %p187_p0 = scmp.ne.s32.totalorder %s151_s2, %s186_s21  ;;  %p192_p2 = scmp.lt.s32.totalorder %s186_s21, %s186_s21 }
   0xa   :  { %v27_v10 = vrot.slane %v22_v9, %v26_v7  ;;  %v31_v11 = vrot.slane %v22_v9, %v30_v8  ;;  %p193_p3 = por %p192_p2, %p191_p1 }
   0xc   :  { %p194_p4 = pnand %p193_p3, %p187_p0 }
  0xc6   :  { %v95_v12 = vpop.f32.mrf.mxu0  ;;  %v105_v13 = vpop.f32.mrf.mxu1 }
  0xc7   :  { %v96_v16 = vadd.f32 %v95_v12, %v27_v10  ;;  %v106_v17 = vadd.f32 %v105_v13, %v27_v10 }
  0xc8   :  { %v97_v14 = vpop.f32.mrf.mxu0  ;;  %v107_v15 = vpop.f32.mrf.mxu1 }
  0xc9   :  { %v98_v18 = vadd.f32 %v97_v14, %v31_v11  ;;  %v108_v19 = vadd.f32 %v107_v15, %v31_v11 }
  0xca   :  { %v99_v21 = vpop.f32.mrf.mxu0  ;;  %v109_v22 = vpop.f32.mrf.mxu1 }
  0xcb   :  { %v171_v23 = vpack.c.bf16 %v98_v18, %v96_v16  ;;  %v173_v24 = vpack.c.bf16 %v108_v19, %v106_v17  ;;  %v100_v27 = vadd.f32 %v99_v21, %v27_v10  ;;  %v110_v28 = vadd.f32 %v109_v22, %v27_v10 }
  0xcc   :  { %v101_v25 = vpop.f32.mrf.mxu0  ;;  %v111_v26 = vpop.f32.mrf.mxu1 }
  0xcd   :  { %141 = vst.msk [vmem:[#allocation2] sm:$0xff] %vm247_vm3, %v171_v23  ;;  %143 = vst.msk [vmem:[#allocation2 + $0x10] sm:$0xff] %vm247_vm3, %v173_v24  ;;  %v102_v29 = vadd.f32 %v101_v25, %v31_v11  ;;  %v112_v30 = vadd.f32 %v111_v26, %v31_v11 }
  0xcf   :  { %v172_v31 = vpack.c.bf16 %v102_v29, %v100_v27  ;;  %v174_v32 = vpack.c.bf16 %v112_v30, %v110_v28 }
  0xd1   :  { %142 = vst.msk [vmem:[#allocation2 + $0x8] sm:$0xff] %vm247_vm3, %v172_v31  ;;  %144 = vst.msk [vmem:[#allocation2 + $0x18] sm:$0xff] %vm247_vm3, %v174_v32 }
  0xd2   :  { %197 = shalt.err (!%p194_p4)
}
  0xd3   :  { %s210_s22 = smov 128   ;;  %s211_s23 = smov 8  }
  0xd4   :  { %156 = dma.vmem_to_hbm [thread:$0]  %s151_s2, 512, %s265_s3, [#allocation3], %s210_s22, %s210_s22, %s211_s23  }
  0xd5   :  { %206 = dma.done.wait [#allocation3], 512  }
  0xd6   :  { %207 = vsyncadd [#allocation3], 4294966784 }
  0xd7   :  { %160 = vsyncpa [#allocation3], 1 }

</bundles_post_ra>
